<compile_context>
chip_gen: v7x
topology: tpu7x:2x2x1
jax: 0.10.0
libtpu: 0.0.40
codegen_flags: <defaults>
</compile_context>

<pallas_src>
import numpy as np
import jax
import jax.numpy as jnp
from jax.experimental import pallas as pl
from jax.experimental.pallas import tpu as pltpu

# Fixed gradient filters (same values as the PyTorch module's __init__).
FILTER_X = np.array([[-3, 0, 3],
                     [-10, 0, 10],
                     [-3, 0, 3]], dtype=np.float32)
FILTER_Y = FILTER_X.T


# ---------------------------------------------------------------------------
# Kernel
# ---------------------------------------------------------------------------
def _channel_grads(x_ref, b, c, up_row, dn_row, zcol):
    """Separable 3x3 gradient pair for one color channel of one row tile.

    x_ref : (NB, 3, R, W) input tile ref (native dtype)
    up_row: (1, W) f32 row directly above the tile (zeros at the image border)
    dn_row: (1, W) f32 row directly below the tile (zeros at the image border)
    zcol  : (R, 1) f32 zeros (hoisted constant)
    Returns (grad_x, grad_y), each (R, W) float32.
    """
    r = x_ref.shape[2]
    x = x_ref[b, c].astype(jnp.float32)                                  # x[i]
    x_up = jnp.concatenate(
        [up_row, x_ref[b, c, pl.ds(0, r - 1), :].astype(jnp.float32)],
        axis=0)                                                          # x[i-1]
    x_dn = jnp.concatenate(
        [x_ref[b, c, pl.ds(1, r - 1), :].astype(jnp.float32), dn_row],
        axis=0)                                                          # x[i+1]

    a = 3.0 * (x_up + x_dn) + 10.0 * x        # vertical [3, 10, 3] smooth
    d = x_dn - x_up                           # vertical [-1, 0, 1] difference

    a_nxt = jnp.concatenate([a[:, 1:], zcol], axis=1)    # a[:, j+1], 0 at edge
    a_prv = jnp.concatenate([zcol, a[:, :-1]], axis=1)   # a[:, j-1]
    d_nxt = jnp.concatenate([d[:, 1:], zcol], axis=1)
    d_prv = jnp.concatenate([zcol, d[:, :-1]], axis=1)

    grad_x = a_nxt - a_prv                           # horizontal [-1, 0, 1]
    grad_y = 3.0 * (d_prv + d_nxt) + 10.0 * d        # horizontal [3, 10, 3]
    return grad_x, grad_y


def _grad_kernel(x_ref, top_ref, bot_ref, o_ref):
    """Row-tiled gradient kernel.

    x_ref  : (NB, 3, R, W)      rows [i*R, (i+1)*R) of NB images
    top_ref: (NB, 3, ALIGN, W)  row block whose LAST row is row i*R - 1
    bot_ref: (NB, 3, ALIGN, W)  row block whose FIRST row is row (i+1)*R
    o_ref  : (NB, 6, R, W)
    """
    nb = o_ref.shape[0]
    r = o_ref.shape[2]
    halo_last = top_ref.shape[2] - 1
    i = pl.program_id(1)
    top_scale = (i > 0).astype(jnp.float32)                        # 0 at top edge
    bot_scale = (i < pl.num_programs(1) - 1).astype(jnp.float32)   # 0 at bottom
    zcol = jnp.zeros((r, 1), jnp.float32)
    for b in range(nb):
        for c in range(3):
            up_row = top_ref[b, c, pl.ds(halo_last, 1), :].astype(jnp.float32) * top_scale
            dn_row = bot_ref[b, c, pl.ds(0, 1), :].astype(jnp.float32) * bot_scale
            gx, gy = _channel_grads(x_ref, b, c, up_row, dn_row, zcol)
            o_ref[b, 2 * c + 0] = gx.astype(o_ref.dtype)
            o_ref[b, 2 * c + 1] = gy.astype(o_ref.dtype)


# ---------------------------------------------------------------------------
# Tiling / VMEM budgeting
# ---------------------------------------------------------------------------
def _round_up(a, m):
    return ((a + m - 1) // m) * m


def _min_row_align(itemsize):
    # minimal second-to-last block extent: f32 -> 8, bf16 -> 16, int8/fp8 -> 32
    return max(8, 8 * (4 // max(int(itemsize), 1)))


def _vmem_budget():
    """(tile-footprint target, scoped-vmem limit) in bytes, generation aware."""
    cap = 64 * 1024 * 1024           # conservative default = v7x VMEM per TensorCore
    try:
        info = pltpu.get_tpu_info()
        v = int(getattr(info, "vmem_capacity_bytes", 0) or 0)
        if v > 0:
            cap = v
    except Exception:
        pass
    limit = min((cap * 5) // 8, 96 * 1024 * 1024)   # ~40 MiB on v7x, ~80 MiB v5e/v6e
    target = (limit * 3) // 4
    return target, limit


def _footprint_bytes(nb, r, w, in_bytes, out_bytes, align):
    """Estimated VMEM for one grid step: double-buffered body in/out blocks,
    the two double-buffered halo windows, in-kernel f32 temporaries, margin."""
    body_in = 2 * nb * 3 * r * w * in_bytes
    body_out = 2 * nb * 6 * r * w * out_bytes
    halos = 2 * 2 * nb * 3 * align * w * in_bytes
    temps = 6 * r * w * 4
    return body_in + body_out + halos + temps + (2 << 20)


def _pick_batch(n, r, w, in_bytes, out_bytes, target, align):
    # Fold several images per grid step (amortizes per-step overhead) while
    # keeping >= 2 grid steps so both v7x TensorCores still get work.
    for cand in range(min(n, 8), 1, -1):
        if n % cand == 0 and n // cand >= 2 and \
                _footprint_bytes(cand, r, w, in_bytes, out_bytes, align) <= target:
            return cand
    return 1


def _choose_tiling(n, h, w, in_bytes, out_bytes, target, align):
    """Returns (nb images per block, rows per tile R, padded height)."""
    h_pad = _round_up(max(h, 1), align)
    # Largest multiple-of-`align` row count whose footprint fits the budget.
    r_fit = align
    r = 2 * align
    while r <= h_pad and _footprint_bytes(1, r, w, in_bytes, out_bytes, align) <= target:
        r_fit = r
        r += align
    if r_fit >= h_pad:
        nb = _pick_batch(n, h_pad, w, in_bytes, out_bytes, target, align)
        return nb, h_pad, h_pad
    # Row-tiled: R must divide the padded height so the halo index maps stay
    # in range; pick the largest such divisor within budget.
    best = align
    d = 2 * align
    while d <= r_fit:
        if h_pad % d == 0:
            best = d
        d += align
    return 1, best, h_pad


# ---------------------------------------------------------------------------
# Public wrapper
# ---------------------------------------------------------------------------
def rgb_gradients(x, *, rows_tile=None, vmem_target_bytes=None, out_dtype=None):
    """x: (N, 3, H, W) NCHW. Returns (N, 6, H, W) where out[:, 2c] is the
    x-gradient and out[:, 2c+1] the y-gradient of channel c (zero padding)."""
    N, C, H, W = x.shape
    if C != 3:
        raise ValueError("RGBgradients expects 3 input channels")
    if not jnp.issubdtype(x.dtype, jnp.floating):
        x = x.astype(jnp.float32)
    in_dtype = jnp.dtype(x.dtype)
    out_dt = jnp.dtype(out_dtype) if out_dtype is not None else in_dtype
    in_bytes, out_bytes = in_dtype.itemsize, out_dt.itemsize
    align = max(_min_row_align(in_bytes), _min_row_align(out_bytes))

    target_default, limit_cap = _vmem_budget()
    target = int(vmem_target_bytes) if vmem_target_bytes is not None else target_default

    if rows_tile is not None:
        if rows_tile <= 0 or rows_tile % align != 0:
            raise ValueError(
                f"rows_tile={rows_tile} must be a positive multiple of {align}")
        R = int(rows_tile)
        H_pad = _round_up(H, R)
        nb = _pick_batch(N, R, W, in_bytes, out_bytes, target, align) if H_pad == R else 1
    else:
        nb, R, H_pad = _choose_tiling(N, H, W, in_bytes, out_bytes, target, align)

    footprint = _footprint_bytes(nb, R, W, in_bytes, out_bytes, align)
    vmem_limit = int(min(limit_cap, max((footprint * 5) // 4, 16 << 20)))

    # Row padding only when strictly needed (awkward H or explicit rows_tile);
    # the zero rows below H reproduce the conv's zero padding exactly.
    x_k = x if H_pad == H else jnp.pad(x, ((0, 0), (0, 0), (0, H_pad - H), (0, 0)))

    n_tiles = H_pad // R
    RB = R // align          # `align`-row blocks per row tile
    HB = H_pad // align      # `align`-row blocks per image

    in_specs = [
        # Tile body: rows [i*R, (i+1)*R) of nb images.
        pl.BlockSpec((nb, 3, R, W), lambda n, i: (n, 0, i, 0)),
        # Halo above: align-row block whose LAST row is row i*R - 1; clamped to
        # block 0 at the top edge and zero-masked in-kernel.
        pl.BlockSpec((nb, 3, align, W),
                     lambda n, i: (n, 0, jnp.maximum(i * RB - 1, 0), 0)),
        # Halo below: align-row block whose FIRST row is row (i+1)*R; clamped
        # to the last block at the bottom edge and zero-masked in-kernel.
        pl.BlockSpec((nb, 3, align, W),
                     lambda n, i: (n, 0, jnp.minimum((i + 1) * RB, HB - 1), 0)),
    ]

    out = pl.pallas_call(
        _grad_kernel,
        out_shape=jax.ShapeDtypeStruct((N, 6, H_pad, W), out_dt),
        grid_spec=pltpu.PrefetchScalarGridSpec(
            num_scalar_prefetch=0,
            grid=(N // nb, n_tiles),
            in_specs=in_specs,
            out_specs=pl.BlockSpec((nb, 6, R, W), lambda n, i: (n, 0, i, 0)),
        ),
        compiler_params=pltpu.CompilerParams(
            dimension_semantics=("parallel", "parallel"),
            vmem_limit_bytes=vmem_limit),
        cost_estimate=pl.CostEstimate(
            flops=30 * N * H * W, transcendentals=0,
            bytes_accessed=N * H * W * (3 * in_bytes + 6 * out_bytes)),
    )(x_k, x_k, x_k)

    if H_pad != H:
        out = out[:, :, :H, :]
    return out


# ---------------------------------------------------------------------------
# Reference + self-test
# ---------------------------------------------------------------------------
def _reference(x):
    """Direct numpy cross-correlation with the PyTorch module's weight_final."""
    x = np.asarray(x, np.float32)
    N, C, H, W = x.shape
    xp = np.pad(x, ((0, 0), (0, 0), (1, 1), (1, 1)))
    out = np.zeros((N, 6, H, W), np.float32)
    for c in range(3):
        for d, f in enumerate((FILTER_X, FILTER_Y)):
            acc = np.zeros((N, H, W), np.float32)
            for di in range(3):
                for dj in range(3):
                    acc += f[di, dj] * xp[:, c, di:di + H, dj:dj + W]
            out[:, 2 * c + d] = acc
    return out


if __name__ == "__main__":
    key = jax.random.PRNGKey(0)
    N, C, H, W = 2, 3, 16, 16   # RGBgradients requires exactly 3 input channels
    x = jax.random.normal(key, (N, C, H, W), dtype=jnp.float32)
    ref = _reference(np.asarray(x))

    # Row-tiled path (2 tiles of 8 rows each, exercising the halo logic).
    out_tiled = jax.block_until_ready(rgb_gradients(x, rows_tile=8))
    np.testing.assert_allclose(np.asarray(out_tiled), ref, rtol=1e-5, atol=1e-4)

    # Auto-selected path (whole image per tile at this small size).
    out_auto = jax.block_until_ready(rgb_gradients(x))
    np.testing.assert_allclose(np.asarray(out_auto), ref, rtol=1e-5, atol=1e-4)

    # Awkward height (H not a multiple of 8): exercises the row-padding path.
    x2 = jax.random.normal(jax.random.PRNGKey(1), (N, C, 13, W), dtype=jnp.float32)
    out_pad = jax.block_until_ready(rgb_gradients(x2))
    np.testing.assert_allclose(np.asarray(out_pad), _reference(np.asarray(x2)),
                               rtol=1e-5, atol=1e-4)

    # Several tiny images: exercises batch folding (nb > 1 per grid step).
    x3 = jax.random.normal(jax.random.PRNGKey(2), (4, C, 8, 32), dtype=jnp.float32)
    out_batch = jax.block_until_ready(rgb_gradients(x3))
    np.testing.assert_allclose(np.asarray(out_batch), _reference(np.asarray(x3)),
                               rtol=1e-5, atol=1e-4)

    print("KERNEL_OK")
</pallas_src>

<mosaic_0001>
module attributes {stable_mosaic.version = 11 : i64} {
  func.func @_grad_kernel(%arg0: i32, %arg1: i32, %arg2: memref<1x3x8x16xf32, #tpu.memory_space<vmem>>, %arg3: memref<1x3x8x16xf32, #tpu.memory_space<vmem>>, %arg4: memref<1x3x8x16xf32, #tpu.memory_space<vmem>>, %arg5: memref<1x6x8x16xf32, #tpu.memory_space<vmem>>) attributes {dimension_semantics = [#tpu.dimension_semantics<parallel>, #tpu.dimension_semantics<parallel>], iteration_bounds = array<i64: 2, 2>, scalar_prefetch = 0 : i64, scratch_operands = 0 : i64, tpu.core_type = #tpu.core_type<tc>, window_params = [{transform_indices = @transform_0, window_bounds = array<i64: 1, 3, 8, 16>}, {transform_indices = @transform_1, window_bounds = array<i64: 1, 3, 8, 16>}, {transform_indices = @transform_2, window_bounds = array<i64: 1, 3, 8, 16>}, {transform_indices = @transform_3, window_bounds = array<i64: 1, 6, 8, 16>}]} {
    %c0_i32 = arith.constant 0 : i32
    %0 = arith.cmpi sgt, %arg1, %c0_i32 : i32
    %1 = arith.extui %0 : i1 to i32
    %2 = arith.sitofp %1 : i32 to f32
    %c1_i32 = arith.constant 1 : i32
    %3 = arith.cmpi slt, %arg1, %c1_i32 : i32
    %4 = arith.extui %3 : i1 to i32
    %5 = arith.sitofp %4 : i32 to f32
    %cst = arith.constant 0.000000e+00 : f32
    %6 = vector.broadcast %cst : f32 to vector<8x1xf32>
    %c0 = arith.constant 0 : index
    %c0_0 = arith.constant 0 : index
    %c7 = arith.constant 7 : index
    %c0_1 = arith.constant 0 : index
    %7 = vector.load %arg3[%c0, %c0_0, %c7, %c0_1] : memref<1x3x8x16xf32, #tpu.memory_space<vmem>>, vector<1x1x1x16xf32>
    %8 = vector.shape_cast %7 : vector<1x1x1x16xf32> to vector<1x16xf32>
    %9 = vector.broadcast %2 : f32 to vector<1x16xf32>
    %10 = arith.mulf %8, %9 : vector<1x16xf32>
    %c0_2 = arith.constant 0 : index
    %c0_3 = arith.constant 0 : index
    %c0_4 = arith.constant 0 : index
    %c0_5 = arith.constant 0 : index
    %11 = vector.load %arg4[%c0_2, %c0_3, %c0_4, %c0_5] : memref<1x3x8x16xf32, #tpu.memory_space<vmem>>, vector<1x1x1x16xf32>
    %12 = vector.shape_cast %11 : vector<1x1x1x16xf32> to vector<1x16xf32>
    %13 = vector.broadcast %5 : f32 to vector<1x16xf32>
    %14 = arith.mulf %12, %13 : vector<1x16xf32>
    %c0_6 = arith.constant 0 : index
    %c0_7 = arith.constant 0 : index
    %c0_8 = arith.constant 0 : index
    %c0_9 = arith.constant 0 : index
    %15 = vector.load %arg2[%c0_6, %c0_7, %c0_8, %c0_9] : memref<1x3x8x16xf32, #tpu.memory_space<vmem>>, vector<1x1x8x16xf32>
    %16 = vector.shape_cast %15 : vector<1x1x8x16xf32> to vector<8x16xf32>
    %c0_10 = arith.constant 0 : index
    %c0_11 = arith.constant 0 : index
    %c0_12 = arith.constant 0 : index
    %c0_13 = arith.constant 0 : index
    %17 = vector.load %arg2[%c0_10, %c0_11, %c0_12, %c0_13] : memref<1x3x8x16xf32, #tpu.memory_space<vmem>>, vector<1x1x7x16xf32>
    %18 = vector.shape_cast %17 : vector<1x1x7x16xf32> to vector<7x16xf32>
    %19 = tpu.concatenate %10, %18 in 0 : vector<1x16xf32>, vector<7x16xf32> -> vector<8x16xf32>
    %c0_14 = arith.constant 0 : index
    %c0_15 = arith.constant 0 : index
    %c1 = arith.constant 1 : index
    %c0_16 = arith.constant 0 : index
    %20 = vector.load %arg2[%c0_14, %c0_15, %c1, %c0_16] : memref<1x3x8x16xf32, #tpu.memory_space<vmem>>, vector<1x1x7x16xf32>
    %21 = vector.shape_cast %20 : vector<1x1x7x16xf32> to vector<7x16xf32>
    %22 = tpu.concatenate %21, %14 in 0 : vector<7x16xf32>, vector<1x16xf32> -> vector<8x16xf32>
    %23 = arith.addf %19, %22 : vector<8x16xf32>
    %cst_17 = arith.constant 3.000000e+00 : f32
    %24 = vector.broadcast %cst_17 : f32 to vector<8x16xf32>
    %25 = arith.mulf %24, %23 : vector<8x16xf32>
    %cst_18 = arith.constant 1.000000e+01 : f32
    %26 = vector.broadcast %cst_18 : f32 to vector<8x16xf32>
    %27 = arith.mulf %26, %16 : vector<8x16xf32>
    %28 = arith.addf %25, %27 : vector<8x16xf32>
    %29 = arith.subf %22, %19 : vector<8x16xf32>
    %30 = vector.extract_strided_slice %28 {offsets = [0, 1], sizes = [8, 15], strides = [1, 1]} : vector<8x16xf32> to vector<8x15xf32>
    %31 = tpu.concatenate %30, %6 in 1 : vector<8x15xf32>, vector<8x1xf32> -> vector<8x16xf32>
    %32 = vector.extract_strided_slice %28 {offsets = [0, 0], sizes = [8, 15], strides = [1, 1]} : vector<8x16xf32> to vector<8x15xf32>
    %33 = tpu.concatenate %6, %32 in 1 : vector<8x1xf32>, vector<8x15xf32> -> vector<8x16xf32>
    %34 = vector.extract_strided_slice %29 {offsets = [0, 1], sizes = [8, 15], strides = [1, 1]} : vector<8x16xf32> to vector<8x15xf32>
    %35 = tpu.concatenate %34, %6 in 1 : vector<8x15xf32>, vector<8x1xf32> -> vector<8x16xf32>
    %36 = vector.extract_strided_slice %29 {offsets = [0, 0], sizes = [8, 15], strides = [1, 1]} : vector<8x16xf32> to vector<8x15xf32>
    %37 = tpu.concatenate %6, %36 in 1 : vector<8x1xf32>, vector<8x15xf32> -> vector<8x16xf32>
    %38 = arith.subf %31, %33 : vector<8x16xf32>
    %39 = arith.addf %37, %35 : vector<8x16xf32>
    %cst_19 = arith.constant 3.000000e+00 : f32
    %40 = vector.broadcast %cst_19 : f32 to vector<8x16xf32>
    %41 = arith.mulf %40, %39 : vector<8x16xf32>
    %cst_20 = arith.constant 1.000000e+01 : f32
    %42 = vector.broadcast %cst_20 : f32 to vector<8x16xf32>
    %43 = arith.mulf %42, %29 : vector<8x16xf32>
    %44 = arith.addf %41, %43 : vector<8x16xf32>
    %c0_21 = arith.constant 0 : index
    %c0_22 = arith.constant 0 : index
    %c0_23 = arith.constant 0 : index
    %c0_24 = arith.constant 0 : index
    %45 = vector.load %arg5[%c0_21, %c0_22, %c0_23, %c0_24] : memref<1x6x8x16xf32, #tpu.memory_space<vmem>>, vector<1x1x8x16xf32>
    %46 = vector.shape_cast %45 : vector<1x1x8x16xf32> to vector<8x16xf32>
    %47 = vector.shape_cast %38 : vector<8x16xf32> to vector<1x1x8x16xf32>
    tpu.vector_store %arg5[%c0_21, %c0_22, %c0_23, %c0_24], %47 {strides = array<i32>} : memref<1x6x8x16xf32, #tpu.memory_space<vmem>>, vector<1x1x8x16xf32>,
    %c0_25 = arith.constant 0 : index
    %c1_26 = arith.constant 1 : index
    %c0_27 = arith.constant 0 : index
    %c0_28 = arith.constant 0 : index
    %48 = vector.load %arg5[%c0_25, %c1_26, %c0_27, %c0_28] : memref<1x6x8x16xf32, #tpu.memory_space<vmem>>, vector<1x1x8x16xf32>
    %49 = vector.shape_cast %48 : vector<1x1x8x16xf32> to vector<8x16xf32>
    %50 = vector.shape_cast %44 : vector<8x16xf32> to vector<1x1x8x16xf32>
    tpu.vector_store %arg5[%c0_25, %c1_26, %c0_27, %c0_28], %50 {strides = array<i32>} : memref<1x6x8x16xf32, #tpu.memory_space<vmem>>, vector<1x1x8x16xf32>,
    %c0_29 = arith.constant 0 : index
    %c1_30 = arith.constant 1 : index
    %c7_31 = arith.constant 7 : index
    %c0_32 = arith.constant 0 : index
    %51 = vector.load %arg3[%c0_29, %c1_30, %c7_31, %c0_32] : memref<1x3x8x16xf32, #tpu.memory_space<vmem>>, vector<1x1x1x16xf32>
    %52 = vector.shape_cast %51 : vector<1x1x1x16xf32> to vector<1x16xf32>
    %53 = vector.broadcast %2 : f32 to vector<1x16xf32>
    %54 = arith.mulf %52, %53 : vector<1x16xf32>
    %c0_33 = arith.constant 0 : index
    %c1_34 = arith.constant 1 : index
    %c0_35 = arith.constant 0 : index
    %c0_36 = arith.constant 0 : index
    %55 = vector.load %arg4[%c0_33, %c1_34, %c0_35, %c0_36] : memref<1x3x8x16xf32, #tpu.memory_space<vmem>>, vector<1x1x1x16xf32>
    %56 = vector.shape_cast %55 : vector<1x1x1x16xf32> to vector<1x16xf32>
    %57 = vector.broadcast %5 : f32 to vector<1x16xf32>
    %58 = arith.mulf %56, %57 : vector<1x16xf32>
    %c0_37 = arith.constant 0 : index
    %c1_38 = arith.constant 1 : index
    %c0_39 = arith.constant 0 : index
    %c0_40 = arith.constant 0 : index
    %59 = vector.load %arg2[%c0_37, %c1_38, %c0_39, %c0_40] : memref<1x3x8x16xf32, #tpu.memory_space<vmem>>, vector<1x1x8x16xf32>
    %60 = vector.shape_cast %59 : vector<1x1x8x16xf32> to vector<8x16xf32>
    %c0_41 = arith.constant 0 : index
    %c1_42 = arith.constant 1 : index
    %c0_43 = arith.constant 0 : index
    %c0_44 = arith.constant 0 : index
    %61 = vector.load %arg2[%c0_41, %c1_42, %c0_43, %c0_44] : memref<1x3x8x16xf32, #tpu.memory_space<vmem>>, vector<1x1x7x16xf32>
    %62 = vector.shape_cast %61 : vector<1x1x7x16xf32> to vector<7x16xf32>
    %63 = tpu.concatenate %54, %62 in 0 : vector<1x16xf32>, vector<7x16xf32> -> vector<8x16xf32>
    %c0_45 = arith.constant 0 : index
    %c1_46 = arith.constant 1 : index
    %c1_47 = arith.constant 1 : index
    %c0_48 = arith.constant 0 : index
    %64 = vector.load %arg2[%c0_45, %c1_46, %c1_47, %c0_48] : memref<1x3x8x16xf32, #tpu.memory_space<vmem>>, vector<1x1x7x16xf32>
    %65 = vector.shape_cast %64 : vector<1x1x7x16xf32> to vector<7x16xf32>
    %66 = tpu.concatenate %65, %58 in 0 : vector<7x16xf32>, vector<1x16xf32> -> vector<8x16xf32>
    %67 = arith.addf %63, %66 : vector<8x16xf32>
    %cst_49 = arith.constant 3.000000e+00 : f32
    %68 = vector.broadcast %cst_49 : f32 to vector<8x16xf32>
    %69 = arith.mulf %68, %67 : vector<8x16xf32>
    %cst_50 = arith.constant 1.000000e+01 : f32
    %70 = vector.broadcast %cst_50 : f32 to vector<8x16xf32>
    %71 = arith.mulf %70, %60 : vector<8x16xf32>
    %72 = arith.addf %69, %71 : vector<8x16xf32>
    %73 = arith.subf %66, %63 : vector<8x16xf32>
    %74 = vector.extract_strided_slice %72 {offsets = [0, 1], sizes = [8, 15], strides = [1, 1]} : vector<8x16xf32> to vector<8x15xf32>
    %75 = tpu.concatenate %74, %6 in 1 : vector<8x15xf32>, vector<8x1xf32> -> vector<8x16xf32>
    %76 = vector.extract_strided_slice %72 {offsets = [0, 0], sizes = [8, 15], strides = [1, 1]} : vector<8x16xf32> to vector<8x15xf32>
    %77 = tpu.concatenate %6, %76 in 1 : vector<8x1xf32>, vector<8x15xf32> -> vector<8x16xf32>
    %78 = vector.extract_strided_slice %73 {offsets = [0, 1], sizes = [8, 15], strides = [1, 1]} : vector<8x16xf32> to vector<8x15xf32>
    %79 = tpu.concatenate %78, %6 in 1 : vector<8x15xf32>, vector<8x1xf32> -> vector<8x16xf32>
    %80 = vector.extract_strided_slice %73 {offsets = [0, 0], sizes = [8, 15], strides = [1, 1]} : vector<8x16xf32> to vector<8x15xf32>
    %81 = tpu.concatenate %6, %80 in 1 : vector<8x1xf32>, vector<8x15xf32> -> vector<8x16xf32>
    %82 = arith.subf %75, %77 : vector<8x16xf32>
    %83 = arith.addf %81, %79 : vector<8x16xf32>
    %cst_51 = arith.constant 3.000000e+00 : f32
    %84 = vector.broadcast %cst_51 : f32 to vector<8x16xf32>
    %85 = arith.mulf %84, %83 : vector<8x16xf32>
    %cst_52 = arith.constant 1.000000e+01 : f32
    %86 = vector.broadcast %cst_52 : f32 to vector<8x16xf32>
    %87 = arith.mulf %86, %73 : vector<8x16xf32>
    %88 = arith.addf %85, %87 : vector<8x16xf32>
    %c0_53 = arith.constant 0 : index
    %c2 = arith.constant 2 : index
    %c0_54 = arith.constant 0 : index
    %c0_55 = arith.constant 0 : index
    %89 = vector.load %arg5[%c0_53, %c2, %c0_54, %c0_55] : memref<1x6x8x16xf32, #tpu.memory_space<vmem>>, vector<1x1x8x16xf32>
    %90 = vector.shape_cast %89 : vector<1x1x8x16xf32> to vector<8x16xf32>
    %91 = vector.shape_cast %82 : vector<8x16xf32> to vector<1x1x8x16xf32>
    tpu.vector_store %arg5[%c0_53, %c2, %c0_54, %c0_55], %91 {strides = array<i32>} : memref<1x6x8x16xf32, #tpu.memory_space<vmem>>, vector<1x1x8x16xf32>,
    %c0_56 = arith.constant 0 : index
    %c3 = arith.constant 3 : index
    %c0_57 = arith.constant 0 : index
    %c0_58 = arith.constant 0 : index
    %92 = vector.load %arg5[%c0_56, %c3, %c0_57, %c0_58] : memref<1x6x8x16xf32, #tpu.memory_space<vmem>>, vector<1x1x8x16xf32>
    %93 = vector.shape_cast %92 : vector<1x1x8x16xf32> to vector<8x16xf32>
    %94 = vector.shape_cast %88 : vector<8x16xf32> to vector<1x1x8x16xf32>
    tpu.vector_store %arg5[%c0_56, %c3, %c0_57, %c0_58], %94 {strides = array<i32>} : memref<1x6x8x16xf32, #tpu.memory_space<vmem>>, vector<1x1x8x16xf32>,
    %c0_59 = arith.constant 0 : index
    %c2_60 = arith.constant 2 : index
    %c7_61 = arith.constant 7 : index
    %c0_62 = arith.constant 0 : index
    %95 = vector.load %arg3[%c0_59, %c2_60, %c7_61, %c0_62] : memref<1x3x8x16xf32, #tpu.memory_space<vmem>>, vector<1x1x1x16xf32>
    %96 = vector.shape_cast %95 : vector<1x1x1x16xf32> to vector<1x16xf32>
    %97 = vector.broadcast %2 : f32 to vector<1x16xf32>
    %98 = arith.mulf %96, %97 : vector<1x16xf32>
    %c0_63 = arith.constant 0 : index
    %c2_64 = arith.constant 2 : index
    %c0_65 = arith.constant 0 : index
    %c0_66 = arith.constant 0 : index
    %99 = vector.load %arg4[%c0_63, %c2_64, %c0_65, %c0_66] : memref<1x3x8x16xf32, #tpu.memory_space<vmem>>, vector<1x1x1x16xf32>
    %100 = vector.shape_cast %99 : vector<1x1x1x16xf32> to vector<1x16xf32>
    %101 = vector.broadcast %5 : f32 to vector<1x16xf32>
    %102 = arith.mulf %100, %101 : vector<1x16xf32>
    %c0_67 = arith.constant 0 : index
    %c2_68 = arith.constant 2 : index
    %c0_69 = arith.constant 0 : index
    %c0_70 = arith.constant 0 : index
    %103 = vector.load %arg2[%c0_67, %c2_68, %c0_69, %c0_70] : memref<1x3x8x16xf32, #tpu.memory_space<vmem>>, vector<1x1x8x16xf32>
    %104 = vector.shape_cast %103 : vector<1x1x8x16xf32> to vector<8x16xf32>
    %c0_71 = arith.constant 0 : index
    %c2_72 = arith.constant 2 : index
    %c0_73 = arith.constant 0 : index
    %c0_74 = arith.constant 0 : index
    %105 = vector.load %arg2[%c0_71, %c2_72, %c0_73, %c0_74] : memref<1x3x8x16xf32, #tpu.memory_space<vmem>>, vector<1x1x7x16xf32>
    %106 = vector.shape_cast %105 : vector<1x1x7x16xf32> to vector<7x16xf32>
    %107 = tpu.concatenate %98, %106 in 0 : vector<1x16xf32>, vector<7x16xf32> -> vector<8x16xf32>
    %c0_75 = arith.constant 0 : index
    %c2_76 = arith.constant 2 : index
    %c1_77 = arith.constant 1 : index
    %c0_78 = arith.constant 0 : index
    %108 = vector.load %arg2[%c0_75, %c2_76, %c1_77, %c0_78] : memref<1x3x8x16xf32, #tpu.memory_space<vmem>>, vector<1x1x7x16xf32>
    %109 = vector.shape_cast %108 : vector<1x1x7x16xf32> to vector<7x16xf32>
    %110 = tpu.concatenate %109, %102 in 0 : vector<7x16xf32>, vector<1x16xf32> -> vector<8x16xf32>
    %111 = arith.addf %107, %110 : vector<8x16xf32>
    %cst_79 = arith.constant 3.000000e+00 : f32
    %112 = vector.broadcast %cst_79 : f32 to vector<8x16xf32>
    %113 = arith.mulf %112, %111 : vector<8x16xf32>
    %cst_80 = arith.constant 1.000000e+01 : f32
    %114 = vector.broadcast %cst_80 : f32 to vector<8x16xf32>
    %115 = arith.mulf %114, %104 : vector<8x16xf32>
    %116 = arith.addf %113, %115 : vector<8x16xf32>
    %117 = arith.subf %110, %107 : vector<8x16xf32>
    %118 = vector.extract_strided_slice %116 {offsets = [0, 1], sizes = [8, 15], strides = [1, 1]} : vector<8x16xf32> to vector<8x15xf32>
    %119 = tpu.concatenate %118, %6 in 1 : vector<8x15xf32>, vector<8x1xf32> -> vector<8x16xf32>
    %120 = vector.extract_strided_slice %116 {offsets = [0, 0], sizes = [8, 15], strides = [1, 1]} : vector<8x16xf32> to vector<8x15xf32>
    %121 = tpu.concatenate %6, %120 in 1 : vector<8x1xf32>, vector<8x15xf32> -> vector<8x16xf32>
    %122 = vector.extract_strided_slice %117 {offsets = [0, 1], sizes = [8, 15], strides = [1, 1]} : vector<8x16xf32> to vector<8x15xf32>
    %123 = tpu.concatenate %122, %6 in 1 : vector<8x15xf32>, vector<8x1xf32> -> vector<8x16xf32>
    %124 = vector.extract_strided_slice %117 {offsets = [0, 0], sizes = [8, 15], strides = [1, 1]} : vector<8x16xf32> to vector<8x15xf32>
    %125 = tpu.concatenate %6, %124 in 1 : vector<8x1xf32>, vector<8x15xf32> -> vector<8x16xf32>
    %126 = arith.subf %119, %121 : vector<8x16xf32>
    %127 = arith.addf %125, %123 : vector<8x16xf32>
    %cst_81 = arith.constant 3.000000e+00 : f32
    %128 = vector.broadcast %cst_81 : f32 to vector<8x16xf32>
    %129 = arith.mulf %128, %127 : vector<8x16xf32>
    %cst_82 = arith.constant 1.000000e+01 : f32
    %130 = vector.broadcast %cst_82 : f32 to vector<8x16xf32>
    %131 = arith.mulf %130, %117 : vector<8x16xf32>
    %132 = arith.addf %129, %131 : vector<8x16xf32>
    %c0_83 = arith.constant 0 : index
    %c4 = arith.constant 4 : index
    %c0_84 = arith.constant 0 : index
    %c0_85 = arith.constant 0 : index
    %133 = vector.load %arg5[%c0_83, %c4, %c0_84, %c0_85] : memref<1x6x8x16xf32, #tpu.memory_space<vmem>>, vector<1x1x8x16xf32>
    %134 = vector.shape_cast %133 : vector<1x1x8x16xf32> to vector<8x16xf32>
    %135 = vector.shape_cast %126 : vector<8x16xf32> to vector<1x1x8x16xf32>
    tpu.vector_store %arg5[%c0_83, %c4, %c0_84, %c0_85], %135 {strides = array<i32>} : memref<1x6x8x16xf32, #tpu.memory_space<vmem>>, vector<1x1x8x16xf32>,
    %c0_86 = arith.constant 0 : index
    %c5 = arith.constant 5 : index
    %c0_87 = arith.constant 0 : index
    %c0_88 = arith.constant 0 : index
    %136 = vector.load %arg5[%c0_86, %c5, %c0_87, %c0_88] : memref<1x6x8x16xf32, #tpu.memory_space<vmem>>, vector<1x1x8x16xf32>
    %137 = vector.shape_cast %136 : vector<1x1x8x16xf32> to vector<8x16xf32>
    %138 = vector.shape_cast %132 : vector<8x16xf32> to vector<1x1x8x16xf32>
    tpu.vector_store %arg5[%c0_86, %c5, %c0_87, %c0_88], %138 {strides = array<i32>} : memref<1x6x8x16xf32, #tpu.memory_space<vmem>>, vector<1x1x8x16xf32>,
    return
  }
  func.func @transform_0(%arg0: i32, %arg1: i32) -> (i32, i32, i32, i32) {
    %c0_i32 = arith.constant 0 : i32
    %c0_i32_0 = arith.constant 0 : i32
    %c0_i32_1 = arith.constant 0 : i32
    return %arg0, %c0_i32, %arg1, %c0_i32_0 : i32, i32, i32, i32
  }
  func.func @transform_1(%arg0: i32, %arg1: i32) -> (i32, i32, i32, i32) {
    %c1_i32 = arith.constant 1 : i32
    %0 = arith.muli %arg1, %c1_i32 : i32
    %c1_i32_0 = arith.constant 1 : i32
    %1 = arith.subi %0, %c1_i32_0 : i32
    %c0_i32 = arith.constant 0 : i32
    %2 = arith.maxsi %1, %c0_i32 : i32
    %c0_i32_1 = arith.constant 0 : i32
    %c0_i32_2 = arith.constant 0 : i32
    %c0_i32_3 = arith.constant 0 : i32
    return %arg0, %c0_i32_1, %2, %c0_i32_2 : i32, i32, i32, i32
  }
  func.func @transform_2(%arg0: i32, %arg1: i32) -> (i32, i32, i32, i32) {
    %c1_i32 = arith.constant 1 : i32
    %0 = arith.addi %arg1, %c1_i32 : i32
    %c1_i32_0 = arith.constant 1 : i32
    %1 = arith.muli %0, %c1_i32_0 : i32
    %c1_i32_1 = arith.constant 1 : i32
    %2 = arith.minsi %1, %c1_i32_1 : i32
    %c0_i32 = arith.constant 0 : i32
    %c0_i32_2 = arith.constant 0 : i32
    %c0_i32_3 = arith.constant 0 : i32
    return %arg0, %c0_i32, %2, %c0_i32_2 : i32, i32, i32, i32
  }
  func.func @transform_3(%arg0: i32, %arg1: i32) -> (i32, i32, i32, i32) {
    %c0_i32 = arith.constant 0 : i32
    %c0_i32_0 = arith.constant 0 : i32
    %c0_i32_1 = arith.constant 0 : i32
    return %arg0, %c0_i32, %arg1, %c0_i32_0 : i32, i32, i32, i32
  }
}

</mosaic_0001>

<bundles_post_ra>
// kernel: tpu_custom_call.1
= control target key start
LH: loop header
LB: loop body
LE: loop exit
PB: predicated region body
PF: predicated region fallthrough
CT: control target
= control target key end

     0   :  { %s1559_s0 = inlined_call_operand.hbm [shape: f32[2,3,16,16], index: 0, kind: input, shape index: {}]   ;;  %s1560_s1 = inlined_call_operand.hbm [shape: f32[2,3,16,16], index: 1, kind: input, shape index: {}]   ;;  %s1561_s2 = inlined_call_operand.hbm [shape: f32[2,3,16,16], index: 2, kind: input, shape index: {}]   ;;  %s1562_s3 = inlined_call_operand.hbm [shape: f32[2,6,16,16], index: 3, kind: output, shape index: {}]  }
   0x1   :  { %1588 = sst [smem:[#allocation23_spill]] %s1559_s0 }
   0x2   :  { %1589 = sst [smem:[#allocation24_spill]] %s1560_s1 }
   0x3   :  { %1590 = sst [smem:[#allocation25_spill]] %s1562_s3 }
   0x4   :  { %8 = vsyncpa [#allocation3], 0 }
   0x5   :  { %10 = vsyncpa [#allocation3 + $0x1], 0 }
   0x6   :  { %11 = vsyncpa [#allocation6], 0 }
   0x7   :  { %13 = vsyncpa [#allocation6 + $0x1], 0 }
   0x8   :  { %14 = vsyncpa [#allocation4], 0 }
   0x9   :  { %16 = vsyncpa [#allocation4 + $0x1], 0  ;;  %s1088_s12 = smov 0   ;;  %s1090_s13 = smov 0  }
   0xa   :  { %s1092_s14 = smov 0   ;;  %s1094_s15 = smov 0  }
   0xb   :  { %s1096_s16 = smov 0   ;;  %s1098_s17 = smov 0  }
   0xc   :  { %s1100_s18 = smov 0   ;;  %s1102_s19 = smov 0  }
   0xd   :  { %s1104_s20 = smov 0   ;;  %s1106_s21 = smov 0  }
   0xe   :  { %s1108_s22 = smov 0   ;;  %s1110_s23 = smov 0  }
   0xf   :  { %s1112_s24 = smov 0   ;;  %s1114_s25 = smov 0  }
  0x10 LB: > { %1591 = sst [smem:[#allocation13_spill]] %s1022_s17  ;;  %s1157_s26 = sadd.s32 4294967295, %s1054_s25   ;;  %s1054_s25 = sphi %s1114_s25, %s22_s25   ;;  %s1050_s24 = sphi %s1112_s24, %s1651_s24   ;;  %s1046_s23 = sphi %s1110_s23, %s1641_s23   ;;  %s1042_s22 = sphi %s1108_s22, %s1650_s22   ;;  %s1038_s21 = sphi %s1106_s21, %s1640_s21   ;;  %s1034_s20 = sphi %s1104_s20, %s1639_s20   ;;  %s1030_s19 = sphi %s1102_s19, %s1649_s19   ;;  %s1026_s18 = sphi %s1100_s18, %s1648_s18   ;;  %s1022_s17 = sphi %s1098_s17, %s1637_s17   ;;  %s1018_s16 = sphi %s1096_s16, %s1647_s16   ;;  %s1014_s15 = sphi %s1094_s15, %s1646_s15   ;;  %s1010_s14 = sphi %s1092_s14, %s1645_s14   ;;  %s1006_s13 = sphi %s1090_s13, %s1644_s13   ;;  %s1002_s12 = sphi %s1088_s12, %s1643_s12  }
  0x11   : > { %1592 = sst [smem:[#allocation14_spill]] %s1026_s18  ;;  %s31_s27 = sadd.s32 1, %s1046_s23 }
  0x12   : > { %1593 = sst [smem:[#allocation15_spill]] %s1034_s20  ;;  %p32_p0 = scmp.ge.s32.totalorder %s31_s27, 2 }
  0x13   : > { %1594 = sst [smem:[#allocation16_spill]] %s1046_s23  ;;  %s34_s28 = sadd.s32 1, %s1050_s24 }
  0x14   : > { %p1571_p1 = scmp.eq.s32.totalorder %s1054_s25, 0  ;;  %p1570_p2 = scmp.eq.s32.totalorder %s1157_s26, 0 }
  0x15   : > { %s1653_s27 = smov (%p32_p0, %s31_s27), 0  ;;  %s1655_s28 = smov (!%p32_p0, %s34_s28), %s1050_s24 }
  0x16   : > { %1595 = sst [smem:[#allocation17_spill]] %s1653_s27  ;;  %s39_s29 = ssub.s32 %s1046_s23, %s1653_s27 }
  0x17   : > { %p36_p3 = scmp.ge.s32.totalorder %s1655_s28, 2  ;;  %s77_s30 = sadd.s32 1, %s1022_s17 }
  0x18   : > { %p84_p4 = scmp.ne.s32.totalorder %s1022_s17, %s1018_s16  ;;  %p90_p6 = scmp.ne.s32.totalorder %s1018_s16, %s1014_s15 }
  0x19   : > { %s1657_s28 = smov (%p36_p3, %s1655_s28), 0  ;;  %p1569_p9 = scmp.lt.s32.totalorder %s1054_s25, 4 }
  0x1a   : > { %1596 = sst [smem:[#allocation18_spill]] %s1657_s28  ;;  %s1173_s4 = ssub.s32 %s1050_s24, %s1657_s28 }
  0x1b   : > { %s1176_s5 = sor.u32 %s39_s29, %s1173_s4  ;;  %p86_p7 = por %p84_p4, %p1571_p1 }
  0x1c   : > { %p1186_p8 = por %p90_p6, %p1570_p2  ;;  %p1568_p10 = scmp.eq.s32.totalorder %s1173_s4, 0 }
  0x1d   : > { %s198_s9 = sand.u32 1, %s1054_s25   ;;  %s200_s10 = sand.u32 1, %s1022_s17  }
  0x1e   : > { %s1597_s6 = scalar_select %p1186_p8, 1, 0 }
  0x1f   : > { %s1196_s8 = scalar_select %p1568_p10, %s1022_s17, %s77_s30  }
  0x20   : > { %s653_s11 = smul.u32 24, %s200_s10  ;;  %p1203_p11 = pnand %p1569_p9, %p86_p7 }
  0x21   : > { %1598 = sst [smem:[#allocation19_spill]] %s1196_s8  ;;  %s1566_s29 = smul.u32 768, %s1050_s24 }
  0x22   : > { %s1600_s1 = sld [smem:[#allocation24_spill]]  ;;  %s202_s30 = scalar_lea.vmem [#allocation5], %s653_s11 }
  0x23   : > { %s213_s10 = sshll.u32 %s202_s30, 4  ;;  %s1217_s7 = scalar_lea.sflag [#allocation6], %s198_s9  ;;  %s1214_s10 = int_to_ptr.vmem [resolvable:$true] %s213_s10 }
  0x24   : > { %p808_p0 = pneg %p1203_p11 }
  0x28   : > { %s1212_s3 = scalar_lea.hbm %s1600_s1, %s1566_s29  ;;  %s811_s29 = scalar_lea.hbm %s1600_s1, 1536 }
  0x29   : > { %s806_s8 = scalar_lea.hbm %s1212_s3, 384  ;;  %p812_p6 = scmp.lt.u32.totalorder %s1212_s3, %s1600_s1 }
  0x2a   : > { %p807_p13 = scmp.ne.s32.totalorder %s1212_s3, %s806_s8  ;;  %p813_p7 = scmp.lt.u32.totalorder %s811_s29, %s806_s8 }
  0x2b   : > { %p815_p9 = scmp.lt.u32.totalorder %s806_s8, %s1212_s3 }
  0x2c   : > { %p809_p3 = pnand %p808_p0, %p807_p13  ;;  %p814_p10 = por %p813_p7, %p812_p6 }
  0x2e   : > { %p810_p4 = pneg %p809_p3  ;;  %p816_p2 = por %p815_p9, %p814_p10 }
  0x30   : > { %p817_p1 = pnand %p816_p2, %p810_p4 }
  0x32   : > { %820 = shalt.err (!%p817_p1)
}
  0x33   : > { %s821_s9 = scalar_lea.vmem %s1214_s10, 384  ;;  %s1056_s30 = smov [#allocation5]  }
  0x34   : > { %p822_p13 = scmp.ne.s32.totalorder %s1214_s10, %s821_s9  ;;  %s826_s27 = sshll.u32 %s1056_s30, 4  ;;  %s827_s27 = int_to_ptr.vmem [resolvable:$false] %s826_s27 }
  0x35   : > { %s828_s17 = scalar_lea.vmem %s827_s27, 768  ;;  %p829_p12 = scmp.lt.s32.totalorder %s1214_s10, %s827_s27 }
  0x36   : > { %p824_p3 = pnand %p822_p13, %p808_p0  ;;  %p830_p6 = scmp.lt.s32.totalorder %s828_s17, %s821_s9 }
  0x38   : > { %p825_p5 = pneg %p824_p3  ;;  %p831_p7 = por %p830_p6, %p829_p12 }
  0x3a   : > { %p832_p9 = pnand %p831_p7, %p825_p5 }
  0x3c   : > { %835 = shalt.err (!%p832_p9)
}
  0x3d   : > { %s1572_s8 = smov 256   ;;  %s1574_s29 = smov 128  }
  0x3e   : > { %s1576_s28 = smov 8   ;;  %p246_p1 = scmp.lt.s32.totalorder %s1054_s25, 5 }
  0x3f   : > { %676 = dma.hbm_to_vmem [thread:$0]  (!%p1203_p11), %s1212_s3, 384, %s1214_s10, %s1217_s7, %s1572_s8, %s1574_s29, %s1576_s28  }
  0x40   : > { %p1601_p2 = scmp.ge.s32.totalorder %s1054_s25, 1  ;;  %s623_s9 = sadd.s32 4294967294, %s1054_s25  }
  0x41   : > { %s43_s30 = sadd.s32 1, %s1034_s20  ;;  %p1603_p10 = scmp.eq.s32.totalorder %s1176_s5, 0 }
  0x42   : > { %p1251_p5 = pnand %p1601_p2, %p246_p1  ;;  %p50_p12 = scmp.ne.s32.totalorder %s1034_s20, %s1030_s19 }
  0x43   : > { %s1260_s27 = scalar_select %p1603_p10, %s1034_s20, %s43_s30  }
  0x44   : > { %p56_p0 = scmp.ne.s32.totalorder %s1030_s19, %s1026_s18  ;;  %p150_p4 = scmp.eq.s32.totalorder %s1157_s26, 3 }
  0x45   : > { %1604 = sst [smem:[#allocation20_spill]] %s1260_s27  ;;  %p156_p13 = scmp.eq.s32.totalorder %s623_s9, 3 }
  0x46   : > { %p1605_p3 = scmp.eq.s32.totalorder %s1054_s25, 0  ;;  %p1606_p7 = scmp.eq.s32.totalorder %s1157_s26, 0 }
  0x47   : > { %p1275_p9 = por %p150_p4, %p50_p12  ;;  %p1279_p1 = por %p156_p13, %p56_p0 }
  0x48   : > { %p52_p6 = por %p1605_p3, %p50_p12  ;;  %p1271_p11 = por %p1606_p7, %p56_p0 }
  0x49   : > { %s1608_s15 = scalar_select %p1275_p9, 1, 0 }
  0x4a   : > { %s1607_s3 = scalar_select %p1271_p11, 1, 0 }
  0x4b   : > { %1609 = sst [smem:[#allocation21_spill]] %s1608_s15  ;;  %s176_s5 = sand.u32 1, %s1034_s20  }
  0x4c   : > { %s1610_s10 = scalar_select %p1279_p1, 1, 0 }
  0x4d   : > { %s1612_s17 = smul.u32 6, %s1050_s24  ;;  %p1613_p2 = scmp.lt.s32.totalorder %s1054_s25, 4 }
  0x4e   : > { %1611 = sst [smem:[#allocation22_spill]] %s1610_s10  ;;  %s651_s8 = smul.u32 24, %s176_s5 }
  0x4f   : > { %s185_s30 = sadd.s32 %s1046_s23, %s1612_s17  ;;  %p1289_p10 = pnand %p1613_p2, %p52_p6 }
  0x50   : > { %s628_s9 = sshll.u32 %s185_s30, 7  ;;  %s1615_s0 = sld [smem:[#allocation23_spill]] }
  0x51   : > { %s180_s20 = scalar_lea.vmem [#allocation2], %s651_s8  ;;  %s1300_s30 = scalar_lea.sflag [#allocation3], %s176_s5 }
  0x52   : > { %s188_s17 = sshll.u32 %s180_s20, 4  ;;  %p838_p0 = pneg %p1289_p10  ;;  %s1298_s17 = int_to_ptr.vmem [resolvable:$true] %s188_s17 }
  0x56   : > { %s1296_s27 = scalar_lea.hbm %s1615_s0, %s628_s9  ;;  %s841_s9 = scalar_lea.hbm %s1615_s0, 1536 }
  0x57   : > { %s836_s23 = scalar_lea.hbm %s1296_s27, 384  ;;  %p842_p3 = scmp.lt.u32.totalorder %s1296_s27, %s1615_s0 }
  0x58   : > { %p837_p12 = scmp.ne.s32.totalorder %s1296_s27, %s836_s23  ;;  %p843_p6 = scmp.lt.u32.totalorder %s841_s9, %s836_s23 }
  0x59   : > { %p845_p2 = scmp.lt.u32.totalorder %s836_s23, %s1296_s27 }
  0x5a   : > { %p839_p4 = pnand %p838_p0, %p837_p12  ;;  %p844_p7 = por %p843_p6, %p842_p3 }
  0x5c   : > { %p840_p13 = pneg %p839_p4  ;;  %p846_p1 = por %p845_p2, %p844_p7 }
  0x5e   : > { %p847_p9 = pnand %p846_p1, %p840_p13 }
  0x60   : > { %850 = shalt.err (!%p847_p9)
}
  0x61   : > { %s851_s20 = scalar_lea.vmem %s1298_s17, 384  ;;  %s1060_s8 = smov [#allocation2]  }
  0x62   : > { %p852_p12 = scmp.ne.s32.totalorder %s1298_s17, %s851_s20  ;;  %s856_s5 = sshll.u32 %s1060_s8, 4  ;;  %s857_s5 = int_to_ptr.vmem [resolvable:$false] %s856_s5 }
  0x63   : > { %s858_s18 = scalar_lea.vmem %s857_s5, 768  ;;  %p859_p11 = scmp.lt.s32.totalorder %s1298_s17, %s857_s5 }
  0x64   : > { %p854_p4 = pnand %p852_p12, %p838_p0  ;;  %p860_p3 = scmp.lt.s32.totalorder %s858_s18, %s851_s20 }
  0x66   : > { %p855_p8 = pneg %p854_p4  ;;  %p861_p6 = por %p860_p3, %p859_p11 }
  0x68   : > { %p862_p7 = pnand %p861_p6, %p855_p8 }
  0x6a   : > { %865 = shalt.err (!%p862_p7)
}
  0x6b   : > { %s1616_s23 = smov 8   ;;  %s1617_s10 = smov 128  }
  0x6c   : > { %s1618_s1 = smov 256   ;;  %s111_s29 = sadd.s32 1, %s1010_s14 }
  0x6d   : > { %673 = dma.hbm_to_vmem [thread:$0]  (!%p1289_p10), %s1296_s27, 384, %s1298_s17, %s1300_s30, %s1618_s1, %s1617_s10, %s1616_s23  }
  0x6e   : > { %p118_p8 = scmp.ne.s32.totalorder %s1010_s14, %s1006_s13  ;;  %p124_p11 = scmp.ne.s32.totalorder %s1006_s13, %s1002_s12 }
  0x6f   : > { %s225_s28 = sand.u32 1, %s1010_s14   ;;  %p1619_p9 = scmp.eq.s32.totalorder %s1054_s25, 0 }
  0x70   : > { %p1620_p0 = scmp.eq.s32.totalorder %s1157_s26, 0  ;;  %s655_s20 = smul.u32 24, %s225_s28 }
  0x71   : > { %p120_p1 = por %p118_p8, %p1619_p9  ;;  %s1622_s8 = smul.u32 768, %s1050_s24 }
  0x72   : > { %p1341_p13 = por %p124_p11, %p1620_p0  ;;  %s227_s18 = scalar_lea.vmem [#allocation7], %s655_s20 }
  0x73   : > { %s998_s5 = sadd.s32 128, %s1622_s8  ;;  %s238_s0 = sshll.u32 %s227_s18, 4  ;;  %s1357_s0 = int_to_ptr.vmem [resolvable:$true] %s238_s0 }
  0x74   : > { %s1621_s9 = scalar_select %p1341_p13, 1, 0 }
  0x75   : > { %p1623_p2 = scmp.eq.s32.totalorder %s1173_s4, 0  ;;  %s1355_s12 = scalar_lea.hbm %s1561_s2, %s998_s5 }
  0x76   : > { %p1624_p10 = scmp.lt.s32.totalorder %s1054_s25, 4  ;;  %s866_s4 = scalar_lea.hbm %s1355_s12, 384 }
  0x77   : > { %s1350_s15 = scalar_select %p1623_p2, %s1010_s14, %s111_s29  }
  0x78   : > { %p1361_p12 = pnand %p1624_p10, %p120_p1  ;;  %p867_p4 = scmp.ne.s32.totalorder %s1355_s12, %s866_s4 }
  0x79   : > { %s871_s20 = scalar_lea.hbm %s1561_s2, 1536  ;;  %p872_p8 = scmp.lt.u32.totalorder %s1355_s12, %s1561_s2 }
  0x7a   : > { %p868_p3 = pneg %p1361_p12  ;;  %p873_p11 = scmp.lt.u32.totalorder %s871_s20, %s866_s4 }
  0x7b   : > { %p875_p1 = scmp.lt.u32.totalorder %s866_s4, %s1355_s12 }
  0x7c   : > { %p869_p6 = pnand %p868_p3, %p867_p4  ;;  %p874_p9 = por %p873_p11, %p872_p8 }
  0x7e   : > { %p870_p7 = pneg %p869_p6  ;;  %p876_p0 = por %p875_p1, %p874_p9 }
  0x80   : > { %p877_p2 = pnand %p876_p0, %p870_p7 }
  0x82   : > { %880 = shalt.err (!%p877_p2)
}
  0x83   : > { %s881_s18 = scalar_lea.vmem %s1357_s0, 384  ;;  %s1061_s27 = smov [#allocation7]  }
  0x84   : > { %p882_p10 = scmp.ne.s32.totalorder %s1357_s0, %s881_s18  ;;  %s886_s17 = sshll.u32 %s1061_s27, 4  ;;  %s887_s17 = int_to_ptr.vmem [resolvable:$false] %s886_s17 }
  0x85   : > { %s888_s29 = scalar_lea.vmem %s887_s17, 768  ;;  %p889_p13 = scmp.lt.s32.totalorder %s1357_s0, %s887_s17 }
  0x86   : > { %p884_p4 = pnand %p882_p10, %p868_p3  ;;  %p890_p8 = scmp.lt.s32.totalorder %s888_s29, %s881_s18 }
  0x88   : > { %p885_p6 = pneg %p884_p4  ;;  %p891_p11 = por %p890_p8, %p889_p13 }
  0x8a   : > { %p892_p9 = pnand %p891_p11, %p885_p6 }
  0x8c   : > { %895 = shalt.err (!%p892_p9)
}
  0x8d   : > { %679 = dma.hbm_to_vmem [thread:$0]  (!%p1361_p12), %s1355_s12, 384, %s1357_s0, %s1217_s7, %s1618_s1, %s1617_s10, %s1616_s23  }
  0x8e   : > { %250 = sbr.rel (%p1251_p5) target bundleno = 329 (0x149), region = 32  ;;  %s1397_s4 = sand.u32 (!%p1251_p5), 1, %s1030_s19  }
  0x8f   : > { %s657_s28 = smul.u32 (!%p1251_p5), 24, %s1397_s4  ;;  %s253_s20 = scalar_lea.sflag (!%p1251_p5), [#allocation3], %s1397_s4 }
  0x90   : > { %p1626_p13 = scmp.ne.s32.totalorder (!%p1251_p5), %s1607_s3, 0 }
  0x91   : > { %s1401_s8 = scalar_lea.vmem (!%p1251_p5), [#allocation2], %s657_s28 }
  0x95   : > { %981 = dma.done.wait (%p1626_p13), %s253_s20, 384  }
  0x96   : > { %983 = vsyncadd (%p1626_p13), %s253_s20, 4294966912  ;;  %s261_s0 = sand.u32 1, %s1157_s26   ;;  %s263_s7 = sand.u32 1, %s1018_s16  }
  0x97   : > { %s658_s11 = smul.u32 24, %s263_s7  ;;  %s262_s23 = scalar_lea.sflag [#allocation6], %s261_s0 }
  0x98   : > { %p1627_p5 = scmp.ne.s32.totalorder %s1597_s6, 0 }
  0x99   : > { %s1409_s10 = scalar_lea.vmem [#allocation5], %s658_s11 }
  0x9a   : > { %985 = dma.done.wait (%p1627_p5), %s262_s23, 384  }
  0x9b   : > { %987 = vsyncadd (%p1627_p5), %s262_s23, 4294966912  ;;  %s272_s1 = sand.u32 1, %s1006_s13   ;;  %p1628_p12 = scmp.ne.s32.totalorder %s1621_s9, 0 }
  0x9c   : > { %s659_s12 = smul.u32 24, %s272_s1 }
  0x9e   : > { %s274_s3 = scalar_lea.vmem [#allocation7], %s659_s12 }
  0x9f   : > { %989 = dma.done.wait (%p1628_p12), %s262_s23, 384  }
  0xa0   : > { %991 = vsyncadd (%p1628_p12), %s262_s23, 4294966912  ;;  %p313_p3 = scmp.gt.s32.totalorder %s1038_s21, 0  ;;  %p316_p7 = scmp.lt.s32.totalorder %s1038_s21, 1  ;;  %vm330_vm0 = vcmask 1040384   ;;  %v634_v2 = vld [vmem:[%s1409_s10 + $0xf] sm:$0x1] }
  0xa1   : > { %v635_v3 = vld [vmem:[%s274_s3 + $0x8] sm:$0x1]  ;;  %vm336_vm1 = vcmask 1046528   ;;  %v319_v8 = vld [vmem:[%s1409_s10 + $0x7] sm:$0x1]  ;;  %s1062_s9 = smov 127  }
  0xa2   : > { %s314_s26 = scalar_select %p313_p3, 1, 0  ;;  %v637_v4 = vld [vmem:[%s1401_s8 + $0x8] sm:$0x7f]  ;;  %v322_v11 = vld [vmem:[%s274_s3] sm:$0x1] }
  0xa3   : > { %s317_s6 = scalar_select %p316_p7, 1, 0  ;;  %v382_v7 = vrot.slane %v637_v4, 7  ;;  %v638_v9 = vld [vmem:[%s1401_s8 + $0x9] sm:$0x7f]  ;;  %v325_v35 = vld [vmem:[%s1401_s8] sm:$0xff] }
  0xa4   : > { %s315_s30 = scvt.s32.f32 %s314_s26  ;;  %v326_v12 = vld [vmem:[%s1401_s8] sm:$0x7f]  ;;  %v641_v17 = vld [vmem:[%s1409_s10 + $0x17] sm:$0x1]  ;;  %v642_v18 = vld [vmem:[%s274_s3 + $0x10] sm:$0x1] }
  0xa5   : > { %s318_s5 = scvt.s32.f32 %s317_s6  ;;  %v328_v16 = vrot.slane %v326_v12, 7  ;;  %v332_v19 = vld [vmem:[%s1401_s8 + $0x1] sm:$0x7f]  ;;  %v644_v22 = vld [vmem:[%s1401_s8 + $0x10] sm:$0x7f]  ;;  %s1063_s18 = smov 1  }
  0xa6   : > { %v320_v0 = vstv %s315_s30  ;;  %v432_v26 = vrot.slane %v644_v22, 7  ;;  %v645_v28 = vld [vmem:[%s1401_s8 + $0x11] sm:$0x7f]  ;;  %v340_v39 = vmul.f32 10.0, %v325_v35  ;;  %v636_v40 = vld [vmem:[%s1401_s8 + $0x8] sm:$0xff]  ;;  %vm347_vm2 = vcmask 121856  }
  0xa7   : > { %v323_v1 = vstv %s318_s5  ;;  %v374_v5 = vmul.f32 %v634_v2, %v320_v0  ;;  %v321_v10 = vmul.f32 %v320_v0, %v319_v8  ;;  %v424_v20 = vmul.f32 %v641_v17, %v320_v0  ;;  %v643_v45 = vld [vmem:[%s1401_s8 + $0x10] sm:$0xff]  ;;  %s660_s27 = smul.u32 48, %s1397_s4  ;;  %s1629_s20 = sld [smem:[#allocation21_spill]] }
  0xa8   : > { %v377_v6 = vmul.f32 %v635_v3, %v323_v1  ;;  %v324_v15 = vmul.f32 %v323_v1, %v322_v11  ;;  %v427_v21 = vmul.f32 %v642_v18, %v323_v1  ;;  %v392_v44 = vmul.f32 10.0, %v636_v40  ;;  %s661_s29 = smul.u32 12, %s1042_s22  ;;  %s1630_s7 = sld [smem:[#allocation25_spill]] }
  0xa9   : > { %v384_v13 = vsel %vm330_vm0, %v374_v5, %v382_v7  ;;  %v331_v24 = vsel %vm330_vm0, %v321_v10, %v328_v16  ;;  %v434_v33 = vsel %vm330_vm0, %v424_v20, %v432_v26  ;;  %v442_v48 = vmul.f32 10.0, %v643_v45  ;;  %s1453_s17 = scalar_lea.vmem [#allocation8], %s660_s27  ;;  %s473_s23 = scalar_lea.sflag [#allocation4], %s1397_s4 }
  0xaa   : > { %v387_v14 = vrot.slane %v377_v6, 1  ;;  %v334_v25 = vrot.slane %v324_v15, 1  ;;  %v437_v29 = vrot.slane %v427_v21, 1  ;;  %vm352_vm3 = vcmask 7168   ;;  %s484_s28 = sadd.s32 %s1038_s21, %s661_s29  ;;  %s487_s22 = sshll.u32 %s1453_s17, 4  ;;  %s1471_s22 = int_to_ptr.vmem [resolvable:$true] %s487_s22 }
  0xab   : > { %vm368_vm4 = vcmask 130048   ;;  %s648_s8 = sshll.u32 %s484_s28, 7  ;;  %s896_s10 = scalar_lea.vmem %s1471_s22, 768 }
  0xac   : > { %v389_v23 = vsel %vm336_vm1, %v638_v9, %v387_v14  ;;  %v337_v30 = vsel %vm336_vm1, %v332_v19, %v334_v25  ;;  %v439_v34 = vsel %vm336_vm1, %v645_v28, %v437_v29  ;;  %p897_p1 = scmp.ne.s32.totalorder %s1471_s22, %s896_s10  ;;  %s1064_s1 = smov [#allocation8]  }
  0xad   : > { %v394_v27 = vsub.f32 %v389_v23, %v384_v13  ;;  %v342_v31 = vsub.f32 %v337_v30, %v331_v24  ;;  %v338_v32 = vadd.f32 %v337_v30, %v331_v24  ;;  %v390_v36 = vadd.f32 %v389_v23, %v384_v13  ;;  %p1631_p0 = scmp.ne.s32.totalorder %s1629_s20, 0  ;;  %s900_s12 = sshll.u32 %s1064_s1, 4  ;;  %s901_s12 = int_to_ptr.vmem [resolvable:$false] %s900_s12 }
  0xae   : > { %v444_v37 = vsub.f32 %v439_v34, %v434_v33  ;;  %v440_v41 = vadd.f32 %v439_v34, %v434_v33  ;;  %s1479_s11 = scalar_lea.hbm %s1630_s7, %s648_s8  ;;  %s902_s3 = scalar_lea.vmem %s901_s12, 1536 }
  0xaf   : > { %405 = vrot.lane.b32.xlu1 %v394_v27, %s1062_s9  ;;  %355 = vrot.lane.b32.xlu0 %v342_v31, %s1062_s9  ;;  %v339_v38 = vmul.f32 3.0, %v338_v32  ;;  %v391_v43 = vmul.f32 3.0, %v390_v36  ;;  %v416_v56 = vmul.f32 10.0, %v394_v27  ;;  %v366_v62 = vmul.f32 10.0, %v342_v31  ;;  %p898_p2 = pnand %p897_p1, %p1631_p0  ;;  %p903_p4 = scmp.lt.s32.totalorder %s1471_s22, %s901_s12 }
  0xb0   : > { %v441_v47 = vmul.f32 3.0, %v440_v41  ;;  %v466_v6 = vmul.f32 10.0, %v444_v37  ;;  %p904_p6 = scmp.lt.s32.totalorder %s902_s3, %s896_s10 }
  0xb1   : > { %v341_v42 = vadd.f32 %v340_v39, %v339_v38  ;;  %v393_v46 = vadd.f32 %v392_v44, %v391_v43  ;;  %p899_p10 = pneg %p898_p2 }
  0xb2   : > { %v443_v49 = vadd.f32 %v442_v48, %v441_v47  ;;  %p905_p8 = por %p904_p6, %p903_p4 }
  0xb3   : > { %409 = vrot.lane.b32.xlu1 %v394_v27, %s1063_s18  ;;  %359 = vrot.lane.b32.xlu0 %v342_v31, %s1063_s18 }
  0xb4   : > { %p906_p11 = pnand %p905_p8, %p899_p10 }
  0xb7   : > { %459 = vrot.lane.b32.xlu1 %v444_v37, %s1063_s18  ;;  %455 = vrot.lane.b32.xlu0 %v444_v37, %s1062_s9 }
  0xbb   : > { %349 = vrot.lane.b32.xlu1 %v341_v42, %s1063_s18  ;;  %344 = vrot.lane.b32.xlu0 %v341_v42, %s1062_s9 }
  0xbf   : > { %400 = vrot.lane.b32.xlu1 %v393_v46, %s1063_s18  ;;  %396 = vrot.lane.b32.xlu0 %v393_v46, %s1062_s9 }
  0xc3   : > { %450 = vrot.lane.b32.xlu1 %v443_v49, %s1063_s18  ;;  %446 = vrot.lane.b32.xlu0 %v443_v49, %s1062_s9 }
 0x121   : > { %v406_v50 = vpop.permute.xlu1 %405  ;;  %v356_v51 = vpop.permute.xlu0 %355 }
 0x122   : > { %v408_v53 = vsel %vm347_vm2, %v406_v50, 0.0  ;;  %v358_v58 = vsel %vm347_vm2, %v356_v51, 0.0 }
 0x125   : > { %v410_v52 = vpop.permute.xlu1 %409  ;;  %v360_v57 = vpop.permute.xlu0 %359 }
 0x126   : > { %v412_v54 = vsel %vm352_vm3, 0.0, %v410_v52  ;;  %v362_v59 = vsel %vm352_vm3, 0.0, %v360_v57 }
 0x127   : > { %v414_v55 = vadd.f32 %v412_v54, %v408_v53  ;;  %v364_v61 = vadd.f32 %v362_v59, %v358_v58 }
 0x129   : > { %v415_v60 = vmul.f32 3.0, %v414_v55  ;;  %v460_v63 = vpop.permute.xlu1 %459  ;;  %v365_v2 = vmul.f32 3.0, %v364_v61  ;;  %v456_v3 = vpop.permute.xlu0 %455 }
 0x12a   : > { %v462_v0 = vsel %vm352_vm3, 0.0, %v460_v63  ;;  %v458_v4 = vsel %vm347_vm2, %v456_v3, 0.0 }
 0x12b   : > { %v417_v1 = vadd.f32 %v416_v56, %v415_v60  ;;  %v367_v5 = vadd.f32 %v366_v62, %v365_v2  ;;  %v464_v7 = vadd.f32 %v462_v0, %v458_v4 }
 0x12d   : > { %640 = vst.msk [vmem:[%s1453_s17 + $0x18] sm:$0xff] %vm368_vm4, %v417_v1  ;;  %v350_v8 = vpop.permute.xlu1 %349  ;;  %633 = vst.msk [vmem:[%s1453_s17 + $0x8] sm:$0xff] %vm368_vm4, %v367_v5  ;;  %v465_v10 = vmul.f32 3.0, %v464_v7  ;;  %v345_v11 = vpop.permute.xlu0 %344 }
 0x12e   : > { %v353_v9 = vsel %vm352_vm3, 0.0, %v350_v8  ;;  %v348_v12 = vsel %vm347_vm2, %v345_v11, 0.0 }
 0x12f   : > { %v467_v13 = vadd.f32 %v466_v6, %v465_v10  ;;  %v363_v14 = vsub.f32 %v348_v12, %v353_v9 }
 0x131   : > { %v401_v15 = vpop.permute.xlu1 %400  ;;  %647 = vst.msk [vmem:[%s1453_s17 + $0x28] sm:$0xff] %vm368_vm4, %v467_v13  ;;  %369 = vst.msk [vmem:[%s1453_s17] sm:$0xff] %vm368_vm4, %v363_v14  ;;  %v397_v17 = vpop.permute.xlu0 %396 }
 0x132   : > { %v403_v16 = vsel %vm352_vm3, 0.0, %v401_v15  ;;  %v399_v18 = vsel %vm347_vm2, %v397_v17, 0.0 }
 0x133   : > { %v413_v19 = vsub.f32 %v399_v18, %v403_v16 }
 0x135   : > { %v451_v20 = vpop.permute.xlu1 %450  ;;  %639 = vst.msk [vmem:[%s1453_s17 + $0x10] sm:$0xff] %vm368_vm4, %v413_v19  ;;  %v447_v22 = vpop.permute.xlu0 %446 }
 0x136   : > { %v453_v21 = vsel %vm352_vm3, 0.0, %v451_v20  ;;  %v449_v23 = vsel %vm347_vm2, %v447_v22, 0.0 }
 0x137   : > { %v463_v24 = vsub.f32 %v449_v23, %v453_v21 }
 0x139   : > { %646 = vst.msk [vmem:[%s1453_s17 + $0x20] sm:$0xff] %vm368_vm4, %v463_v24 }
 0x13a   : > { %909 = shalt.err (!%p906_p11)
}
 0x13b   : > { %s910_s26 = scalar_lea.hbm %s1479_s11, 768  ;;  %s914_s5 = scalar_lea.hbm %s1630_s7, 3072 }
 0x13c   : > { %p911_p9 = scmp.ne.s32.totalorder %s1479_s11, %s910_s26  ;;  %p915_p12 = scmp.lt.u32.totalorder %s1479_s11, %s1630_s7 }
 0x13d   : > { %p916_p3 = scmp.lt.u32.totalorder %s914_s5, %s910_s26  ;;  %p918_p1 = scmp.lt.u32.totalorder %s910_s26, %s1479_s11 }
 0x13e   : > { %p912_p13 = pnand %p911_p9, %p1631_p0 }
 0x13f   : > { %p917_p7 = por %p916_p3, %p915_p12 }
 0x140   : > { %p913_p5 = pneg %p912_p13 }
 0x141   : > { %p919_p2 = por %p918_p1, %p917_p7 }
 0x143   : > { %p920_p10 = pnand %p919_p2, %p913_p5 }
 0x145   : > { %923 = shalt.err (!%p920_p10)
}
 0x146   : > { %s1065_s27 = smov 128   ;;  %s1066_s17 = smov 256  }
 0x147   : > { %s1067_s29 = smov 8  }
 0x148   : > { %668 = dma.vmem_to_hbm [thread:$0]  (%p1631_p0), %s1471_s22, 768, %s1479_s11, %s473_s23, %s1065_s27, %s1066_s17, %s1067_s29  }
 0x149 PF: > { %s1632_s28 = sld [smem:[#allocation14_spill]]  ;;  %s1633_s8 = sld [smem:[#allocation22_spill]] }
 0x14a   : > { %p685_p4 = scmp.ge.s32.totalorder %s1054_s25, 2 }
 0x14f   : > { %s502_s21 = sand.u32 1, %s1632_s28   ;;  %p1634_p6 = scmp.ne.s32.totalorder %s1633_s8, 0 }
 0x150   : > { %s503_s0 = scalar_lea.sflag [#allocation4], %s502_s21 }
 0x151   : > { %p681_p8 = pnand %p685_p4, %p1634_p6 }
 0x153   : > { %993 = dma.done.wait (!%p681_p8), %s503_s0, 768  }
 0x154   : > { %995 = vsyncadd (!%p681_p8), %s503_s0, 4294966528  ;;  %s22_s25 = sadd.s32 1, %s1054_s25   ;;  %s1636_s4 = sld [smem:[#allocation13_spill]] }
 0x155   : > { %p1512_p11 = scmp.ge.s32.totalorder %s22_s25, 6   ;;  %s1637_s17 = sld [smem:[#allocation19_spill]] }
 0x156   : > { %s1638_s22 = sld [smem:[#allocation15_spill]]  ;;  %s1639_s20 = sld [smem:[#allocation20_spill]] }
 0x157   : > { %s1640_s21 = sld [smem:[#allocation16_spill]]  ;;  %s1641_s23 = sld [smem:[#allocation17_spill]] }
 0x158   : > { %s1642_s11 = sld [smem:[#allocation18_spill]]  ;;  %s1643_s12 = smov %s1006_s13 }
 0x159   : > { %s1644_s13 = smov %s1010_s14  ;;  %s1645_s14 = smov %s1350_s15 }
 0x15a   : > { %s1646_s15 = smov %s1018_s16  ;;  %s1647_s16 = smov %s1636_s4 }
 0x15b   : > { %s1648_s18 = smov %s1030_s19  ;;  %21 = sbr.rel (!%p1512_p11) target bundleno = 16 (0x10), region = 112 }
 0x15c   : > { %s1649_s19 = smov %s1638_s22  ;;  %s1650_s22 = smov %s1050_s24 }
 0x15e   : > { %s1651_s24 = smov %s1642_s11 }
 0x162   :  { %508 = vsyncpa [#allocation3], 1 }
 0x163   :  { %510 = vsyncpa [#allocation3 + $0x1], 1 }
 0x164   :  { %511 = vsyncpa [#allocation6], 1 }
 0x165   :  { %513 = vsyncpa [#allocation6 + $0x1], 1 }
 0x166   :  { %514 = vsyncpa [#allocation4], 1 }
 0x167   :  { %516 = vsyncpa [#allocation4 + $0x1], 1 }

</bundles_post_ra>
